<compile_context>
chip_gen: v6e
topology: v6e:2x2x1
jax: 0.10.0
libtpu: 0.0.40
codegen_flags: <defaults>
</compile_context>

<pallas_src>
import functools

import numpy as np

import jax
import jax.numpy as jnp
from jax.experimental import pallas as pl
from jax.experimental.pallas import tpu as pltpu


_X_RESIDENT_BUDGET = 12 * 1024 * 1024  # bytes; x2 pipeline buffers stays well under v7x 64 MiB


def _round_up(x, m):
    return ((x + m - 1) // m) * m


def _pick_tiles(n):
    """dst-row tile tm, src/K tile tk, padded node count n_pad (no n_pad^2 blow-up)."""
    n_pad = _round_up(n, 128)
    tm = 256 if (n_pad % 256 == 0 and n_pad >= 512) else 128
    tk = max(t for t in (512, 256, 128) if n_pad % t == 0)
    return tm, tk, n_pad


def build_block_schedule(adj_np, n_pad, tm, tk):
    """Host-side: per dst-row tile, list of A column-blocks that contain any edge.

    Returns flattened (n_row_tiles * max_k,) int32 arrays `cols`, `valid`, plus max_k and the
    number of real (valid) blocks.  Empty row tiles get one dummy (masked) entry so their output
    tile is still produced.  Padding repeats the last real block so no extra DMA is triggered.
    """
    n = adj_np.shape[0]
    a = np.zeros((n_pad, n_pad), np.float32)
    a[:n, :n] = adj_np
    n_rows, n_cols = n_pad // tm, n_pad // tk
    blk_nnz = a.reshape(n_rows, tm, n_cols, tk).sum(axis=(1, 3)) > 0

    per_row = []
    max_k = 1
    for i in range(n_rows):
        ks = np.nonzero(blk_nnz[i])[0].tolist()
        if not ks:
            ks, v = [0], [0]
        else:
            v = [1] * len(ks)
        per_row.append((ks, v))
        max_k = max(max_k, len(ks))

    cols, valid = [], []
    for ks, v in per_row:
        pad = max_k - len(ks)
        cols.extend(ks + [ks[-1]] * pad)
        valid.extend(v + [0] * pad)

    nnz = int(np.sum(valid))
    return (jnp.asarray(np.array(cols, np.int32)),
            jnp.asarray(np.array(valid, np.int32)),
            max_k, nnz)


def _sage_layer_kernel(cols_ref, valid_ref, a_ref, *rest, apply_relu, x_resident,
                       tm, tk, f_pad, max_k):
    """One SAGEConv('mean') layer: block-sparse aggregation + fused projection epilogue."""
    if x_resident:
        x_ref, dinv_ref, w_ref, b_ref, o_ref, agg_ref = rest
    else:
        xk_ref, xd_ref, dinv_ref, w_ref, b_ref, o_ref, agg_ref = rest

    i = pl.program_id(0)
    k = pl.program_id(1)
    sched = i * max_k + k

    @pl.when(k == 0)
    def _init():
        agg_ref[...] = jnp.zeros_like(agg_ref)

    # Unnormalized neighbor sum: only real (nonzero) A blocks contribute; padded schedule slots
    # are skipped (their block index repeats the previous one, so no extra DMA either).
    @pl.when(valid_ref[sched] != 0)
    def _accumulate():
        if x_resident:
            src = pl.multiple_of(cols_ref[sched] * tk, tk)
            xk = x_ref[pl.ds(src, tk), :]
        else:
            xk = xk_ref[...]
        agg_ref[...] += jnp.dot(a_ref[...].astype(jnp.bfloat16), xk,
                                preferred_element_type=jnp.float32)

    @pl.when(k == pl.num_programs(1) - 1)
    def _finalize():
        if x_resident:
            dst = pl.multiple_of(i * tm, tm)
            xd = x_ref[pl.ds(dst, tm), :]
        else:
            xd = xd_ref[...]
        # Exact mean: f32 per-row 1/deg scale (zero-degree rows have agg == 0).
        neigh = (agg_ref[...] * dinv_ref[...]).astype(jnp.bfloat16)
        # Two dots on static ref slices of [W_self ; W_neigh] (no (tm, 2*f_pad) concat copy).
        out = jnp.dot(xd, w_ref[:f_pad, :], preferred_element_type=jnp.float32)
        out = out + jnp.dot(neigh, w_ref[f_pad:, :], preferred_element_type=jnp.float32)
        out = out + b_ref[...]
        if apply_relu:
            out = jnp.maximum(out, 0.0)
        o_ref[...] = out.astype(o_ref.dtype)


def sage_layer(a_i8, x_pad, dinv, w_cat, bias, cols, valid, *, max_k, nnz,
               apply_relu, out_dtype, tm, tk, x_resident=None):
    """out = X @ W_self + diag(deg_inv) (A @ X) @ W_neigh + b [+ relu] on padded operands."""
    n_pad, f_pad = x_pad.shape
    h_pad = w_cat.shape[1]
    n_rows = n_pad // tm
    out_isz = jnp.dtype(out_dtype).itemsize

    x_bytes = n_pad * f_pad * 2  # bf16
    if x_resident is None:
        x_resident = x_bytes <= _X_RESIDENT_BUDGET

    if x_resident:
        # X fetched once, held resident; kernel slices src/dst tiles with pl.ds.
        x_specs = [pl.BlockSpec((n_pad, f_pad), lambda i, k, c, v: (0, 0))]
        x_args = (x_pad,)
    else:
        # Streamed: one (tk, f_pad) src tile per (nonzero) schedule entry + the dst tile.
        x_specs = [
            pl.BlockSpec((tk, f_pad), lambda i, k, c, v: (c[i * max_k + k], 0)),
            pl.BlockSpec((tm, f_pad), lambda i, k, c, v: (i, 0)),
        ]
        x_args = (x_pad, x_pad)

    in_specs = (
        [pl.BlockSpec((tm, tk), lambda i, k, c, v: (i, c[i * max_k + k]))]   # A (int8, 0/1)
        + x_specs
        + [
            pl.BlockSpec((tm, 1), lambda i, k, c, v: (i, 0)),                # deg_inv (f32)
            pl.BlockSpec((2 * f_pad, h_pad), lambda i, k, c, v: (0, 0)),     # [W_self ; W_neigh]
            pl.BlockSpec((1, h_pad), lambda i, k, c, v: (0, 0)),             # bias (f32)
        ]
    )

    # Explicit VMEM budget: every streamed operand gets 2 pipeline buffers (constants included).
    vmem = 2 * tm * tk * 1                       # A tiles
    vmem += 2 * (x_bytes if x_resident else (tk * f_pad * 2 + tm * f_pad * 2))
    vmem += 2 * tm * 4                           # deg_inv
    vmem += 2 * (2 * f_pad) * h_pad * 2          # weights
    vmem += 2 * h_pad * 4                        # bias
    vmem += 2 * tm * h_pad * out_isz             # output tiles
    vmem += tm * f_pad * 4                       # f32 accumulator scratch
    vmem_limit = int(min(max(vmem + (4 << 20), 32 << 20), 60 << 20))  # safe on v5e/v6e/v7x

    agg_flops = 2 * nnz * tm * tk * f_pad
    proj_flops = 2 * n_pad * (2 * f_pad) * h_pad
    x_read = x_bytes if x_resident else (nnz * tk * f_pad * 2 + n_rows * tm * f_pad * 2)
    bytes_accessed = (nnz * tm * tk * 1 + x_read + n_pad * 4
                      + (2 * f_pad) * h_pad * 2 + h_pad * 4 + n_pad * h_pad * out_isz)

    kernel = functools.partial(
        _sage_layer_kernel, apply_relu=apply_relu, x_resident=x_resident,
        tm=tm, tk=tk, f_pad=f_pad, max_k=max_k)

    return pl.pallas_call(
        kernel,
        out_shape=jax.ShapeDtypeStruct((n_pad, h_pad), out_dtype),
        grid_spec=pltpu.PrefetchScalarGridSpec(
            num_scalar_prefetch=2,
            grid=(n_rows, max_k),
            in_specs=in_specs,
            out_specs=pl.BlockSpec((tm, h_pad), lambda i, k, c, v: (i, 0)),
            scratch_shapes=[pltpu.VMEM((tm, f_pad), jnp.float32)],
        ),
        compiler_params=pltpu.CompilerParams(
            dimension_semantics=("parallel", "arbitrary"),
            vmem_limit_bytes=vmem_limit,
        ),
        cost_estimate=pl.CostEstimate(
            flops=int(agg_flops + proj_flops), transcendentals=0,
            bytes_accessed=int(bytes_accessed)),
    )(cols, valid, a_i8, *x_args, dinv, w_cat, bias)


def graphsage_forward(adj, x, params, x_resident=None):
    """adj: [N, N] 0/1 float (adj[dst, src]); params = [(w_self, w_neigh, bias)] * 3 (f32).

    Returns [N, h_feats] f32.  The block-sparsity schedule is built on host from the concrete
    adjacency (standard graph-kernel preprocessing), so call this outside jit.
    """
    n = adj.shape[0]
    tm, tk, n_pad = _pick_tiles(n)

    adj_np = np.asarray(jax.device_get(adj), np.float32)
    cols, valid, max_k, nnz = build_block_schedule(adj_np, n_pad, tm, tk)

    # 0/1 adjacency in int8 (exact, half the HBM bytes of bf16); exact f32 1/deg for the mean.
    a_i8 = jnp.zeros((n_pad, n_pad), jnp.int8).at[:n, :n].set((adj > 0).astype(jnp.int8))
    deg = jnp.sum(adj, axis=1)
    dinv = jnp.zeros((n_pad, 1), jnp.float32).at[:n, 0].set(1.0 / jnp.maximum(deg, 1.0))

    # Pad + cast node features once; intermediates stay padded bf16 between layers.
    f0 = x.shape[1]
    f0_pad = _round_up(f0, 128)
    h = jnp.zeros((n_pad, f0_pad), jnp.bfloat16).at[:n, :f0].set(x.astype(jnp.bfloat16))

    n_layers = len(params)
    for li, (w_self, w_neigh, bias) in enumerate(params):
        f_in, f_out = w_self.shape
        f_in_pad = _round_up(f_in, 128)
        f_out_pad = _round_up(f_out, 128)

        # Stacked, zero-padded weight [W_self ; W_neigh] : (2*f_in_pad, f_out_pad), bf16.
        w_cat = jnp.zeros((2 * f_in_pad, f_out_pad), jnp.float32)
        w_cat = w_cat.at[:f_in, :f_out].set(w_self)
        w_cat = w_cat.at[f_in_pad:f_in_pad + f_in, :f_out].set(w_neigh)
        w_cat = w_cat.astype(jnp.bfloat16)

        b_pad = jnp.zeros((1, f_out_pad), jnp.float32).at[0, :f_out].set(bias.reshape(-1))

        last = li == n_layers - 1
        h = sage_layer(
            a_i8, h, dinv, w_cat, b_pad, cols, valid,
            max_k=max_k, nnz=nnz,
            apply_relu=not last,
            out_dtype=jnp.float32 if last else jnp.bfloat16,
            tm=tm, tk=tk, x_resident=x_resident,
        )

    return h[:n, :params[-1][0].shape[1]]


def init_params(key, in_feats, h_feats):
    """Deterministic synthetic weights (shapes match DGL SAGEConv fc_self/fc_neigh/bias)."""
    dims = [(in_feats, h_feats), (h_feats, h_feats), (h_feats, h_feats)]
    params = []
    for d_in, d_out in dims:
        key, k1, k2, k3 = jax.random.split(key, 4)
        scale = 1.0 / jnp.sqrt(jnp.float32(d_in))
        w_self = jax.random.normal(k1, (d_in, d_out), jnp.float32) * scale
        w_neigh = jax.random.normal(k2, (d_in, d_out), jnp.float32) * scale
        bias = jax.random.normal(k3, (1, d_out), jnp.float32) * 0.1
        params.append((w_self, w_neigh, bias))
    return params


def build_graph(key, num_nodes):
    """Deterministic directed DAG (edges only src < dst) -> 0/1 adjacency adj[dst, src].

    The DAG structure yields an all-zero A block for the first dst-row tile, so the demo
    exercises the block-sparse schedule (masked/padded slots) and zero-in-degree nodes.
    """
    u = jax.random.uniform(key, (num_nodes, num_nodes))
    adj = (u < 0.25).astype(jnp.float32)
    tri = jnp.tril(jnp.ones((num_nodes, num_nodes), jnp.float32), k=-1)  # keep dst > src
    return adj * tri


if __name__ == "__main__":
    N = 200          # > 128 so the multi-tile (grid > (1,1)) reduction path is exercised
    IN_FEATS = 16
    H_FEATS = 32

    key = jax.random.PRNGKey(0)
    k_graph, k_feat, k_param = jax.random.split(key, 3)

    adj = build_graph(k_graph, N)
    x = jax.random.normal(k_feat, (N, IN_FEATS), jnp.float32)
    params = init_params(k_param, IN_FEATS, H_FEATS)

    # pure-JAX f32 reference of the module semantics (row-normalized mean aggregation)
    deg = jnp.sum(adj, axis=1, keepdims=True)
    a_norm = adj / jnp.maximum(deg, 1.0)
    ref = x
    for li, (ws, wn, b) in enumerate(params):
        ref = ref @ ws + (a_norm @ ref) @ wn + b
        if li < len(params) - 1:
            ref = jnp.maximum(ref, 0.0)

    out = graphsage_forward(adj, x, params)                      # resident-X path (auto)
    out = jax.block_until_ready(out)
    out_s = graphsage_forward(adj, x, params, x_resident=False)  # streamed-X path
    out_s = jax.block_until_ready(out_s)

    assert out.shape == (N, H_FEATS)
    assert bool(jnp.all(jnp.isfinite(out)))
    # bf16 operands with f32 accumulation / exact f32 mean -> loose tolerance vs all-f32 ref
    assert bool(jnp.allclose(out, ref, rtol=0.2, atol=0.2)), float(jnp.max(jnp.abs(out - ref)))
    assert bool(jnp.allclose(out_s, ref, rtol=0.2, atol=0.2)), float(jnp.max(jnp.abs(out_s - ref)))
    print("KERNEL_OK")
</pallas_src>

<mosaic_0001>
module attributes {stable_mosaic.version = 11 : i64} {
  func.func @_sage_layer_kernel(%arg0: i32, %arg1: i32, %arg2: memref<2xi32, #tpu.memory_space<smem>>, %arg3: memref<2xi32, #tpu.memory_space<smem>>, %arg4: memref<128x256xi8, #tpu.memory_space<vmem>>, %arg5: memref<256x128xbf16, #tpu.memory_space<vmem>>, %arg6: memref<128x1xf32, #tpu.memory_space<vmem>>, %arg7: memref<256x128xbf16, #tpu.memory_space<vmem>>, %arg8: memref<1x128xf32, #tpu.memory_space<vmem>>, %arg9: memref<128x128xbf16, #tpu.memory_space<vmem>>, %arg10: memref<128x128xf32, #tpu.memory_space<vmem>>) attributes {dimension_semantics = [#tpu.dimension_semantics<parallel>, #tpu.dimension_semantics<arbitrary>], iteration_bounds = array<i64: 2, 1>, scalar_prefetch = 2 : i64, scratch_operands = 1 : i64, tpu.core_type = #tpu.core_type<tc>, window_params = [{transform_indices = @transform_0, window_bounds = array<i64: 128, 256>}, {pipeline_mode = #tpu.pipeline_mode<synchronous>, transform_indices = @transform_1, window_bounds = array<i64: 256, 128>}, {transform_indices = @transform_2, window_bounds = array<i64: 128, 1>}, {pipeline_mode = #tpu.pipeline_mode<synchronous>, transform_indices = @transform_3, window_bounds = array<i64: 256, 128>}, {pipeline_mode = #tpu.pipeline_mode<synchronous>, transform_indices = @transform_4, window_bounds = array<i64: 1, 128>}, {transform_indices = @transform_5, window_bounds = array<i64: 128, 128>}]} {
    %c1_i32 = arith.constant 1 : i32
    %0 = arith.muli %arg0, %c1_i32 : i32
    %1 = arith.addi %0, %arg1 : i32
    %c0_i32 = arith.constant 0 : i32
    %2 = arith.cmpi eq, %arg1, %c0_i32 : i32
    %3 = arith.extui %2 : i1 to i32
    %c0_i32_0 = arith.constant 0 : i32
    %4 = arith.cmpi ne, %3, %c0_i32_0 : i32
    scf.if %4 {
      %cst = arith.constant 0.000000e+00 : f32
      %13 = vector.broadcast %cst : f32 to vector<128x128xf32>
      %c0 = arith.constant 0 : index
      %c0_5 = arith.constant 0 : index
      %14 = vector.load %arg10[%c0, %c0_5] : memref<128x128xf32, #tpu.memory_space<vmem>>, vector<128x128xf32>
      tpu.vector_store %arg10[%c0, %c0_5], %13 {strides = array<i32>} : memref<128x128xf32, #tpu.memory_space<vmem>>, vector<128x128xf32>,
    } else {
    }
    %5 = arith.index_cast %1 : i32 to index
    %6 = memref.load %arg3[%5] : memref<2xi32, #tpu.memory_space<smem>>
    %c0_i32_1 = arith.constant 0 : i32
    %7 = arith.cmpi ne, %6, %c0_i32_1 : i32
    %8 = arith.extui %7 : i1 to i32
    %c0_i32_2 = arith.constant 0 : i32
    %9 = arith.cmpi ne, %8, %c0_i32_2 : i32
    scf.if %9 {
      %13 = arith.index_cast %1 : i32 to index
      %14 = memref.load %arg2[%13] : memref<2xi32, #tpu.memory_space<smem>>
      %c256_i32 = arith.constant 256 : i32
      %15 = arith.muli %14, %c256_i32 : i32
      %16 = tpu.assume_multiple %15, 256 : i32
      %17 = arith.index_cast %16 : i32 to index
      %c0 = arith.constant 0 : index
      %18 = vector.load %arg5[%17, %c0] : memref<256x128xbf16, #tpu.memory_space<vmem>>, vector<256x128xbf16>
      %c0_5 = arith.constant 0 : index
      %c0_6 = arith.constant 0 : index
      %19 = vector.load %arg10[%c0_5, %c0_6] : memref<128x128xf32, #tpu.memory_space<vmem>>, vector<128x128xf32>
      %c0_7 = arith.constant 0 : index
      %c0_8 = arith.constant 0 : index
      %20 = vector.load %arg4[%c0_7, %c0_8] : memref<128x256xi8, #tpu.memory_space<vmem>>, vector<128x256xi8>
      %21 = arith.sitofp %20 : vector<128x256xi8> to vector<128x256xbf16>
      %cst = arith.constant dense<0.000000e+00> : vector<128x128xf32>
      %22 = tpu.matmul %21, %18, %cst {dimension_numbers = #tpu.dot_dimension_numbers<[1], [0], [0], [1], [0, 0, 1, 1], [], []>} : vector<128x256xbf16>, vector<256x128xbf16>, vector<128x128xf32> -> vector<128x128xf32>
      %23 = arith.addf %19, %22 : vector<128x128xf32>
      %c0_9 = arith.constant 0 : index
      %c0_10 = arith.constant 0 : index
      %24 = vector.load %arg10[%c0_9, %c0_10] : memref<128x128xf32, #tpu.memory_space<vmem>>, vector<128x128xf32>
      tpu.vector_store %arg10[%c0_9, %c0_10], %23 {strides = array<i32>} : memref<128x128xf32, #tpu.memory_space<vmem>>, vector<128x128xf32>,
    } else {
    }
    %c0_i32_3 = arith.constant 0 : i32
    %10 = arith.cmpi eq, %arg1, %c0_i32_3 : i32
    %11 = arith.extui %10 : i1 to i32
    %c0_i32_4 = arith.constant 0 : i32
    %12 = arith.cmpi ne, %11, %c0_i32_4 : i32
    scf.if %12 {
      %c128_i32 = arith.constant 128 : i32
      %13 = arith.muli %arg0, %c128_i32 : i32
      %14 = tpu.assume_multiple %13, 128 : i32
      %15 = arith.index_cast %14 : i32 to index
      %c0 = arith.constant 0 : index
      %16 = vector.load %arg5[%15, %c0] : memref<256x128xbf16, #tpu.memory_space<vmem>>, vector<128x128xbf16>
      %c0_5 = arith.constant 0 : index
      %c0_6 = arith.constant 0 : index
      %17 = vector.load %arg10[%c0_5, %c0_6] : memref<128x128xf32, #tpu.memory_space<vmem>>, vector<128x128xf32>
      %c0_7 = arith.constant 0 : index
      %c0_8 = arith.constant 0 : index
      %18 = vector.load %arg6[%c0_7, %c0_8] : memref<128x1xf32, #tpu.memory_space<vmem>>, vector<128x1xf32>
      %19 = vector.broadcast %18 : vector<128x1xf32> to vector<128x128xf32>
      %20 = arith.mulf %17, %19 : vector<128x128xf32>
      %21 = arith.truncf %20 : vector<128x128xf32> to vector<128x128xbf16>
      %c0_9 = arith.constant 0 : index
      %c0_10 = arith.constant 0 : index
      %22 = vector.load %arg7[%c0_9, %c0_10] : memref<256x128xbf16, #tpu.memory_space<vmem>>, vector<128x128xbf16>
      %cst = arith.constant dense<0.000000e+00> : vector<128x128xf32>
      %23 = tpu.matmul %16, %22, %cst {dimension_numbers = #tpu.dot_dimension_numbers<[1], [0], [0], [1], [0, 0, 1, 1], [], []>} : vector<128x128xbf16>, vector<128x128xbf16>, vector<128x128xf32> -> vector<128x128xf32>
      %c128 = arith.constant 128 : index
      %c0_11 = arith.constant 0 : index
      %24 = vector.load %arg7[%c128, %c0_11] : memref<256x128xbf16, #tpu.memory_space<vmem>>, vector<128x128xbf16>
      %cst_12 = arith.constant dense<0.000000e+00> : vector<128x128xf32>
      %25 = tpu.matmul %21, %24, %cst_12 {dimension_numbers = #tpu.dot_dimension_numbers<[1], [0], [0], [1], [0, 0, 1, 1], [], []>} : vector<128x128xbf16>, vector<128x128xbf16>, vector<128x128xf32> -> vector<128x128xf32>
      %26 = arith.addf %23, %25 : vector<128x128xf32>
      %c0_13 = arith.constant 0 : index
      %c0_14 = arith.constant 0 : index
      %27 = vector.load %arg8[%c0_13, %c0_14] : memref<1x128xf32, #tpu.memory_space<vmem>>, vector<1x128xf32>
      %28 = vector.broadcast %27 : vector<1x128xf32> to vector<128x128xf32>
      %29 = arith.addf %26, %28 : vector<128x128xf32>
      %cst_15 = arith.constant 0.000000e+00 : f32
      %30 = vector.broadcast %cst_15 : f32 to vector<128x128xf32>
      %31 = arith.maximumf %29, %30 : vector<128x128xf32>
      %32 = arith.truncf %31 : vector<128x128xf32> to vector<128x128xbf16>
      %c0_16 = arith.constant 0 : index
      %c0_17 = arith.constant 0 : index
      %33 = vector.load %arg9[%c0_16, %c0_17] : memref<128x128xbf16, #tpu.memory_space<vmem>>, vector<128x128xbf16>
      tpu.vector_store %arg9[%c0_16, %c0_17], %32 {strides = array<i32>} : memref<128x128xbf16, #tpu.memory_space<vmem>>, vector<128x128xbf16>,
    } else {
    }
    return
  }
  func.func @transform_0(%arg0: i32, %arg1: i32, %arg2: memref<2xi32, #tpu.memory_space<smem>>, %arg3: memref<2xi32, #tpu.memory_space<smem>>) -> (i32, i32) {
    %c1_i32 = arith.constant 1 : i32
    %0 = arith.muli %arg0, %c1_i32 : i32
    %1 = arith.addi %0, %arg1 : i32
    %2 = arith.index_cast %1 : i32 to index
    %3 = memref.load %arg2[%2] : memref<2xi32, #tpu.memory_space<smem>>
    %c0_i32 = arith.constant 0 : i32
    return %arg0, %3 : i32, i32
  }
  func.func @transform_1(%arg0: i32, %arg1: i32, %arg2: memref<2xi32, #tpu.memory_space<smem>>, %arg3: memref<2xi32, #tpu.memory_space<smem>>) -> (i32, i32) {
    %c0_i32 = arith.constant 0 : i32
    %c0_i32_0 = arith.constant 0 : i32
    %c0_i32_1 = arith.constant 0 : i32
    return %c0_i32, %c0_i32_0 : i32, i32
  }
  func.func @transform_2(%arg0: i32, %arg1: i32, %arg2: memref<2xi32, #tpu.memory_space<smem>>, %arg3: memref<2xi32, #tpu.memory_space<smem>>) -> (i32, i32) {
    %c0_i32 = arith.constant 0 : i32
    %c0_i32_0 = arith.constant 0 : i32
    return %arg0, %c0_i32 : i32, i32
  }
  func.func @transform_3(%arg0: i32, %arg1: i32, %arg2: memref<2xi32, #tpu.memory_space<smem>>, %arg3: memref<2xi32, #tpu.memory_space<smem>>) -> (i32, i32) {
    %c0_i32 = arith.constant 0 : i32
    %c0_i32_0 = arith.constant 0 : i32
    %c0_i32_1 = arith.constant 0 : i32
    return %c0_i32, %c0_i32_0 : i32, i32
  }
  func.func @transform_4(%arg0: i32, %arg1: i32, %arg2: memref<2xi32, #tpu.memory_space<smem>>, %arg3: memref<2xi32, #tpu.memory_space<smem>>) -> (i32, i32) {
    %c0_i32 = arith.constant 0 : i32
    %c0_i32_0 = arith.constant 0 : i32
    %c0_i32_1 = arith.constant 0 : i32
    return %c0_i32, %c0_i32_0 : i32, i32
  }
  func.func @transform_5(%arg0: i32, %arg1: i32, %arg2: memref<2xi32, #tpu.memory_space<smem>>, %arg3: memref<2xi32, #tpu.memory_space<smem>>) -> (i32, i32) {
    %c0_i32 = arith.constant 0 : i32
    %c0_i32_0 = arith.constant 0 : i32
    return %arg0, %c0_i32 : i32, i32
  }
}

</mosaic_0001>

<bundles_post_ra>
// kernel: tpu_custom_call.1
= control target key start
LH: loop header
LB: loop body
LE: loop exit
PB: predicated region body
PF: predicated region fallthrough
CT: control target
= control target key end

     0   :  { %s2298_s0 = inlined_call_operand.vmem [shape: s32[2], index: 0, kind: input, shape index: {}]   ;;  %s2299_s2 = inlined_call_operand.vmem [shape: s8[256,256], index: 2, kind: input, shape index: {}]   ;;  %s2300_s3 = inlined_call_operand.vmem [shape: bf16[256,128], index: 3, kind: input, shape index: {}]   ;;  %s2301_s4 = inlined_call_operand.vmem [shape: f32[256,1], index: 4, kind: input, shape index: {}]   ;;  %s2302_s5 = inlined_call_operand.hbm [shape: bf16[256,128], index: 5, kind: input, shape index: {}]   ;;  %s2303_s6 = inlined_call_operand.vmem [shape: f32[1,128], index: 6, kind: input, shape index: {}]   ;;  %s2304_s7 = inlined_call_operand.hbm [shape: bf16[256,128], index: 7, kind: output, shape index: {}]   ;;  %s2305_s1 = inlined_call_operand.vmem [shape: s32[2], index: 1, kind: input, shape index: {}]  }
   0x1   :  { %2308 = sst [smem:[#allocation14_spill]] %s2302_s5  ;;  %s12_s26 = sshll.u32 %s2298_s0, 4  ;;  %s13_s26 = int_to_ptr.vmem [resolvable:$true] %s12_s26 }
   0x2   :  { %s16_s29 = sshll.u32 %s2305_s1, 4  ;;  %s1854_s30 = scalar_lea.vmem %s13_s26, 16  ;;  %s17_s29 = int_to_ptr.vmem [resolvable:$true] %s16_s29 }
   0x3   :  { %p1855_p0 = scmp.ne.s32.totalorder %s13_s26, %s1854_s30  ;;  %p1859_p1 = scmp.lt.s32.totalorder %s13_s26, %s13_s26 }
   0x4   :  { %p1860_p2 = scmp.lt.s32.totalorder %s1854_s30, %s1854_s30 }
   0x6   :  { %p1861_p3 = por %p1860_p2, %p1859_p1 }
   0x8   :  { %p1862_p4 = pnand %p1861_p3, %p1855_p0 }
   0xa   :  { %1865 = shalt.err (!%p1862_p4)  }
   0xb   :  { %s1988_s8 = smov [#allocation4]   ;;  %s1866_s9 = scalar_lea.vmem %s17_s29, 16 }
   0xc   :  { %15 = dma.vmem_to_smem %s13_s26, 16, %s1988_s8, [#allocation3] }
   0xd   :  { %p1867_p5 = scmp.ne.s32.totalorder %s17_s29, %s1866_s9  ;;  %p1871_p6 = scmp.lt.s32.totalorder %s17_s29, %s17_s29 }
   0xe   :  { %p1872_p7 = scmp.lt.s32.totalorder %s1866_s9, %s1866_s9 }
  0x10   :  { %p1873_p8 = por %p1872_p7, %p1871_p6 }
  0x12   :  { %p1874_p9 = pnand %p1873_p8, %p1867_p5 }
  0x14   :  { %1877 = shalt.err (!%p1874_p9)  }
  0x15   :  { %s1989_s0 = smov [#allocation5]  }
  0x16   :  { %19 = dma.vmem_to_smem %s17_s29, 16, %s1989_s0, [#allocation3] }
  0x17   :  { %1954 = dma.done.wait [#allocation3], 32 }
  0x18   :  { %1955 = vsyncadd [#allocation3], 4294967264 }
  0x19   :  { %21 = sfence }
  0x1a   :  { %22 = vsyncpa [#allocation7], 0 }
  0x1b   :  { %23 = vsyncpa [#allocation8], 0 }
  0x1c   :  { %25 = vsyncpa [#allocation8 + $0x1], 0  ;;  %s2044_s1 = smov 0   ;;  %s2046_s10 = smov 0  }
  0x1d   :  { %s2048_s11 = smov 0   ;;  %s2050_s12 = smov 0  }
  0x1e   :  { %s2052_s13 = smov 0   ;;  %s2054_s14 = smov 0  }
  0x1f LB: > { %s1417_s15 = sadd.s32 4294967295, %s1986_s14   ;;  %s1418_s16 = sadd.s32 4294967294, %s1986_s14   ;;  %s1986_s14 = sphi %s2054_s14, %s31_s14   ;;  %s1982_s13 = sphi %s2052_s13, %s2322_s13   ;;  %s1978_s12 = sphi %s2050_s12, %s2321_s12   ;;  %s1974_s11 = sphi %s2048_s11, %s2320_s11   ;;  %s1970_s10 = sphi %s2046_s10, %s2319_s10   ;;  %s1966_s1 = sphi %s2044_s1, %s2318_s1  }
  0x20   : > { %s43_s17 = sadd.s32 1, %s1982_s13  ;;  %s171_s18 = sadd.s32 1, %s1974_s11 }
  0x21   : > { %p45_p10 = scmp.ge.s32.totalorder %s43_s17, 2  ;;  %p181_p11 = scmp.ne.s32.totalorder %s1974_s11, %s1970_s10 }
  0x22   : > { %p182_p12 = scmp.eq.s32.totalorder %s1417_s15, 1  ;;  %p187_p13 = scmp.ne.s32.totalorder %s1970_s10, %s1966_s1 }
  0x23   : > { %s2324_s17 = smov (%p45_p10, %s43_s17), 0  ;;  %p188_p1 = scmp.eq.s32.totalorder %s1418_s16, 1 }
  0x24   : > { %2309 = sst [smem:[#allocation13_spill]] %s2324_s17  ;;  %p2084_p0 = por %p182_p12, %p181_p11 }
  0x25   : > { %s168_s20 = ssub.s32 %s1982_s13, %s2324_s17  ;;  %p1419_p2 = scmp.ge.s32.totalorder %s1986_s14, 1 }
  0x26   : > { %p169_p3 = scmp.eq.s32.totalorder %s168_s20, 0  ;;  %p2091_p4 = por %p188_p1, %p187_p13 }
  0x27   : > { %p195_p5 = scmp.lt.s32.totalorder %s1986_s14, 3  ;;  %p2103_p7 = scmp.eq.s32.totalorder %s1417_s15, 0 }
  0x28   : > { %s2097_s22 = scalar_select %p169_p3, %s1974_s11, %s171_s18  }
  0x29   : > { %p2099_p6 = pnand %p1419_p2, %p195_p5  ;;  %s1990_s25 = smov [#allocation6]  }
  0x2a   : > { %s210_s26 = sshll.u32 %s1990_s25, 4  ;;  %s211_s26 = int_to_ptr.vmem [resolvable:$true] %s210_s26 }
  0x2b   : > { %p1744_p8 = pneg %p2099_p6  ;;  %s1889_s27 = scalar_lea.vmem %s211_s26, 2048 }
  0x2c   : > { %p1890_p11 = scmp.ne.s32.totalorder %s211_s26, %s1889_s27  ;;  %p1897_p1 = scmp.lt.s32.totalorder %s211_s26, %s211_s26 }
  0x2d   : > { %p1745_p9 = pnand %p2103_p7, %p1744_p8  ;;  %p1898_p2 = scmp.lt.s32.totalorder %s1889_s27, %s1889_s27 }
  0x2f   : > { %p1880_p10 = pneg %p1745_p9  ;;  %p1899_p3 = por %p1898_p2, %p1897_p1 }
  0x31   : > { %p1892_p12 = pnand %p1890_p11, %p1880_p10 }
  0x33   : > { %p1893_p13 = pneg %p1892_p12 }
  0x35   : > { %p1900_p5 = pnand %p1899_p3, %p1893_p13 }
  0x37   : > { %1903 = shalt.err (!%p1900_p5)
}
  0x38   : > { %s1991_s28 = smov 64   ;;  %s1992_s29 = smov 4  }
  0x39   : > { %s2314_s5 = sld [smem:[#allocation14_spill]] }
  0x3b   : > { %257 = sbr.rel (%p2099_p6) target bundleno = 726 (0x2d6), region = 40 }
  0x3f   : > { %1747 = dma.hbm_to_vmem [thread:$0]  (!%p1745_p9), %s2314_s5, 2048, %s211_s26, [#allocation7], %s1991_s28, %s1991_s28, %s1992_s29  }
  0x40   : > { %1957 = dma.done.wait (%p2103_p7), [#allocation7], 2048  }
  0x41   : > { %1959 = vsyncadd (%p2103_p7), [#allocation7], 4294965248  ;;  %s1425_s9 = sshll.u32 %s1978_s12, 2  ;;  %s2307_s0 = sand.u32 1, %s1970_s10   ;;  %v1993_v0 = vmov 0.0  }
  0x42   : > { %s298_s15 = sld [smem:[#allocation4 + %s1978_s12]]  ;;  %p2123_p8 = scmp.lt.s32.totalorder %s1425_s9, 7  ;;  %326 = vst [vmem:[#allocation2 + $0x30] sm:$0xff] %v1993_v0  ;;  %327 = vst [vmem:[#allocation2] sm:$0xff] %v1993_v0 }
  0x43   : > { %328 = vst [vmem:[#allocation2 + $0x58] sm:$0xff] %v1993_v0  ;;  %329 = vst [vmem:[#allocation2 + $0x18] sm:$0xff] %v1993_v0  ;;  %s342_s18 = sld [smem:[#allocation5 + %s1978_s12]]  ;;  %s1424_s20 = sshll.u32 %s2307_s0, 6 }
  0x44   : > { %330 = vst [vmem:[#allocation2 + $0x50] sm:$0xff] %v1993_v0  ;;  %331 = vst [vmem:[#allocation2 + $0x68] sm:$0xff] %v1993_v0  ;;  %s2326_s9 = smov (!%p2123_p8, %s1425_s9), 7  ;;  %s1429_s23 = sshll.u32 %s1978_s12, 4 }
  0x45   : > { %332 = vst [vmem:[#allocation2 + $0x8] sm:$0xff] %v1993_v0  ;;  %333 = vst [vmem:[#allocation2 + $0x48] sm:$0xff] %v1993_v0  ;;  %p314_p6 = scmp.lt.s32.totalorder %s1429_s23, 31  ;;  %s1427_s25 = sshll.u32 %s2326_s9, 1 }
  0x46   : > { %334 = vst [vmem:[#allocation2 + $0x40] sm:$0xff] %v1993_v0  ;;  %335 = vst [vmem:[#allocation2 + $0x20] sm:$0xff] %v1993_v0  ;;  %s2143_s0 = scalar_lea.vmem [#allocation9], %s1424_s20 }
  0x47   : > { %336 = vst [vmem:[#allocation2 + $0x10] sm:$0xff] %v1993_v0  ;;  %337 = vst [vmem:[#allocation2 + $0x38] sm:$0xff] %v1993_v0  ;;  %s2328_s23 = smov (!%p314_p6, %s1429_s23), 31 }
  0x48   : > { %338 = vst [vmem:[#allocation2 + $0x60] sm:$0xff] %v1993_v0  ;;  %339 = vst [vmem:[#allocation2 + $0x70] sm:$0xff] %v1993_v0  ;;  %s1426_s24 = sshll.u32 %s298_s15, 1  ;;  %s1430_s26 = sshll.u32 %s2328_s23, 3 }
  0x49   : > { %340 = vst [vmem:[#allocation2 + $0x78] sm:$0xff] %v1993_v0  ;;  %341 = vst [vmem:[#allocation2 + $0x28] sm:$0xff] %v1993_v0  ;;  %p303_p7 = scmp.lt.s32.totalorder %s1426_s24, 1  ;;  %s2136_s30 = scalar_lea.vmem %s2301_s4, %s1430_s26 }
  0x4a   : > { %p1431_p9 = scmp.eq.s32.totalorder %s342_s18, 0 }
  0x4b   : > { %s2330_s24 = smov (!%p303_p7, %s1426_s24), 1  ;;  %s347_s9 = sld [smem:[#allocation4 + %s1978_s12]] (!%p1431_p9) }
  0x4c   : > { %s306_s27 = sadd.s32 %s1427_s25, %s2330_s24  ;;  %346 = sbr.rel (%p1431_p9) target bundleno = 346 (0x15a), region = 52 }
  0x4d   : > { %s1428_s8 = sshll.u32 %s306_s27, 3 }
  0x4e   : > { %s2141_s16 = scalar_lea.vmem %s2299_s2, %s1428_s8 }
  0x51   : > { %v2147_v1 = vld [vmem:[%s2141_s16 + $0x8] sm:$0xff]  ;;  %s1432_s5 = sshll.u32 %s347_s9, 8  ;;  %v401_v21 = vld [vmem:[%s2141_s16] sm:$0xff]  ;;  %v404_v27 = vld [vmem:[%s2141_s16 + $0x18] sm:$0xff] }
  0x52   : > { %v2150_v2 = vld [vmem:[%s2141_s16 + $0x28] sm:$0xff]  ;;  %v410_v3 = vunpack.c.l.s8.bf16 %v2147_v1  ;;  %s349_s17 = sshra.s32 %s1432_s5, 3  ;;  %v405_v22 = vld [vmem:[%s2141_s16 + $0x20] sm:$0xff]  ;;  %v409_v23 = vunpack.c.l.s8.bf16 %v401_v21  ;;  %v412_v25 = vunpack.c.h.s8.bf16 %v2147_v1  ;;  %v408_v28 = vld [vmem:[%s2141_s16 + $0x38] sm:$0xff]  ;;  %v411_v29 = vunpack.c.h.s8.bf16 %v401_v21 }
  0x53   : > { %v418_v4 = vunpack.c.l.s8.bf16 %v2150_v2  ;;  %s1433_s15 = sshll.u32 %s349_s17, 2  ;;  %v417_v24 = vunpack.c.l.s8.bf16 %v405_v22  ;;  %v420_v26 = vunpack.c.h.s8.bf16 %v2150_v2  ;;  %v419_v30 = vunpack.c.h.s8.bf16 %v405_v22  ;;  %v403_v33 = vld [vmem:[%s2141_s16 + $0x10] sm:$0xff]  ;;  %v393_v45 = vld [vmem:[#allocation2 + $0x40] sm:$0xff]  ;;  %v387_v63 = vld [vmem:[#allocation2 + $0x58] sm:$0xff] }
  0x54   : > { %553 = vmatprep.mubr.bf16.mxu0 %v410_v3  ;;  %s2157_s23 = scalar_lea.vmem %s2300_s3, %s1433_s15  ;;  %v414_v31 = vunpack.c.l.s8.bf16 %v404_v27  ;;  %v422_v32 = vunpack.c.l.s8.bf16 %v408_v28  ;;  %v407_v34 = vld [vmem:[%s2141_s16 + $0x30] sm:$0xff]  ;;  %v413_v35 = vunpack.c.l.s8.bf16 %v403_v33  ;;  %v416_v37 = vunpack.c.h.s8.bf16 %v404_v27  ;;  %v386_v53 = vld [vmem:[#allocation2] sm:$0xff] }
  0x55   : > { %585 = vmatprep.mubr.bf16.mxu1 %v418_v4  ;;  %v1812_v5 = vld [vmem:[%s2157_s23 + $0x78] sm:$0xff]   ;;  %v1814_v7 = vld [vmem:[%s2157_s23 + $0x70] sm:$0xff]   ;;  %v1816_v9 = vld [vmem:[%s2157_s23 + $0x68] sm:$0xff]   ;;  %v421_v36 = vunpack.c.l.s8.bf16 %v407_v34  ;;  %v424_v38 = vunpack.c.h.s8.bf16 %v408_v28  ;;  %v415_v39 = vunpack.c.h.s8.bf16 %v403_v33  ;;  %v423_v40 = vunpack.c.h.s8.bf16 %v407_v34 }
  0x56   : > { %v1813_v6 = vld [vmem:[%s2157_s23 + $0x38] sm:$0xff]   ;;  %1562 = vmatprep.subr.bf16.mxu0 %v1812_v5  ;;  %1722 = vmatprep.subr.bf16.mxu1 %v1812_v5  ;;  %v1815_v8 = vld [vmem:[%s2157_s23 + $0x30] sm:$0xff]   ;;  %v1817_v10 = vld [vmem:[%s2157_s23 + $0x28] sm:$0xff]  }
  0x57   : > { %1563 = vmatpush3.bf16.msra.mxu0 %v1813_v6  ;;  %1730 = vmatpush3.bf16.msra.mxu1 %v1813_v6  ;;  %v1818_v11 = vld [vmem:[%s2157_s23 + $0x60] sm:$0xff]   ;;  %v1820_v13 = vld [vmem:[%s2157_s23 + $0x58] sm:$0xff]   ;;  %v1822_v15 = vld [vmem:[%s2157_s23 + $0x50] sm:$0xff]  }
  0x58   : > { %1564 = vmatprep.subr.bf16.mxu0 %v1814_v7  ;;  %1723 = vmatprep.subr.bf16.mxu1 %v1814_v7  ;;  %v1819_v12 = vld [vmem:[%s2157_s23 + $0x20] sm:$0xff]   ;;  %v1821_v14 = vld [vmem:[%s2157_s23 + $0x18] sm:$0xff]   ;;  %v1823_v16 = vld [vmem:[%s2157_s23 + $0x10] sm:$0xff]  }
  0x59   : > { %v1824_v17 = vld [vmem:[%s2157_s23 + $0x48] sm:$0xff]   ;;  %v1826_v19 = vld [vmem:[%s2157_s23 + $0x40] sm:$0xff]   ;;  %v385_v43 = vld [vmem:[#allocation2 + $0x30] sm:$0xff] }
  0x5a   : > { %v1825_v18 = vld [vmem:[%s2157_s23 + $0x8] sm:$0xff]   ;;  %v1827_v20 = vld [vmem:[%s2157_s23] sm:$0xff]   ;;  %v395_v1 = vld [vmem:[#allocation2 + $0x10] sm:$0xff] }
  0x5b   : > { %1565 = vmatpush3.bf16.msra.mxu0 %v1815_v8  ;;  %1731 = vmatpush3.bf16.msra.mxu1 %v1815_v8  ;;  %v394_v55 = vld [vmem:[#allocation2 + $0x20] sm:$0xff] }
  0x5c   : > { %1566 = vmatprep.subr.bf16.mxu0 %v1816_v9  ;;  %1724 = vmatprep.subr.bf16.mxu1 %v1816_v9  ;;  %v388_v9 = vld [vmem:[#allocation2 + $0x18] sm:$0xff]  ;;  %v397_v21 = vld [vmem:[#allocation2 + $0x60] sm:$0xff] }
  0x5f   : > { %1567 = vmatpush3.bf16.msra.mxu0 %v1817_v10  ;;  %1732 = vmatpush3.bf16.msra.mxu1 %v1817_v10 }
  0x60   : > { %1568 = vmatprep.subr.bf16.mxu0 %v1818_v11  ;;  %1725 = vmatprep.subr.bf16.mxu1 %v1818_v11  ;;  %v396_v11 = vld [vmem:[#allocation2 + $0x38] sm:$0xff] }
  0x63   : > { %1569 = vmatpush3.bf16.msra.mxu0 %v1819_v12  ;;  %1733 = vmatpush3.bf16.msra.mxu1 %v1819_v12 }
  0x64   : > { %1570 = vmatprep.subr.bf16.mxu0 %v1820_v13  ;;  %1726 = vmatprep.subr.bf16.mxu1 %v1820_v13 }
  0x67   : > { %1571 = vmatpush3.bf16.msra.mxu0 %v1821_v14  ;;  %1734 = vmatpush3.bf16.msra.mxu1 %v1821_v14 }
  0x68   : > { %1572 = vmatprep.subr.bf16.mxu0 %v1822_v15  ;;  %1727 = vmatprep.subr.bf16.mxu1 %v1822_v15 }
  0x6b   : > { %1573 = vmatpush3.bf16.msra.mxu0 %v1823_v16  ;;  %1735 = vmatpush3.bf16.msra.mxu1 %v1823_v16 }
  0x6c   : > { %1574 = vmatprep.subr.bf16.mxu0 %v1824_v17  ;;  %1728 = vmatprep.subr.bf16.mxu1 %v1824_v17 }
  0x6f   : > { %1575 = vmatpush3.bf16.msra.mxu0 %v1825_v18  ;;  %1736 = vmatpush3.bf16.msra.mxu1 %v1825_v18 }
  0x70   : > { %1576 = vmatprep.subr.bf16.mxu0 %v1826_v19  ;;  %1729 = vmatprep.subr.bf16.mxu1 %v1826_v19  ;;  %v389_v19 = vld [vmem:[#allocation2 + $0x50] sm:$0xff] }
  0x73   : > { %1577 = vmatpush3.bf16.msra.mxu0 %v1827_v20  ;;  %1737 = vmatpush3.bf16.msra.mxu1 %v1827_v20 }
  0x76   : > { %554 = vmatmul.mubr.bf16.vlgmr.msra.gmra.mxu0 %v409_v23  ;;  %586 = vmatmul.mubr.bf16.vlgmr.msra.gmra.mxu1 %v417_v24 }
  0x77   : > { %561 = vmatprep.mubr.bf16.mxu0 %v412_v25  ;;  %593 = vmatprep.mubr.bf16.mxu1 %v420_v26 }
  0x7e   : > { %562 = vmatmul.mubr.bf16.gmra.mxu0 %v411_v29  ;;  %594 = vmatmul.mubr.bf16.gmra.mxu1 %v419_v30  ;;  %v390_v29 = vld [vmem:[#allocation2 + $0x68] sm:$0xff] }
  0x7f   : > { %569 = vmatprep.mubr.bf16.mxu0 %v414_v31  ;;  %601 = vmatprep.mubr.bf16.mxu1 %v422_v32  ;;  %v398_v31 = vld [vmem:[#allocation2 + $0x70] sm:$0xff] }
  0x86   : > { %570 = vmatmul.mubr.bf16.gmra.mxu0 %v413_v35  ;;  %602 = vmatmul.mubr.bf16.gmra.mxu1 %v421_v36 }
  0x87   : > { %577 = vmatprep.mubr.bf16.mxu0 %v416_v37  ;;  %609 = vmatprep.mubr.bf16.mxu1 %v424_v38 }
  0x8e   : > { %578 = vmatmul.mubr.bf16.gmra.mxu0 %v415_v39  ;;  %610 = vmatmul.mubr.bf16.gmra.mxu1 %v423_v40  ;;  %v391_v39 = vld [vmem:[#allocation2 + $0x8] sm:$0xff] }
 0x136   : > { %v1578_v41 = vpop.f32.mrf.mxu0  ;;  %v1602_v42 = vpop.f32.mrf.mxu1 }
 0x138   : > { %v1579_v44 = vpop.f32.mrf.mxu0  ;;  %v1603_v46 = vpop.f32.mrf.mxu1 }
 0x139   : > { %v1580_v47 = vadd.f32 %v1579_v44, %v1578_v41  ;;  %v1604_v48 = vadd.f32 %v1603_v46, %v1602_v42  ;;  %v399_v41 = vld [vmem:[#allocation2 + $0x78] sm:$0xff] }
 0x13a   : > { %v1581_v49 = vpop.f32.mrf.mxu0  ;;  %v1605_v50 = vpop.f32.mrf.mxu1 }
 0x13b   : > { %v618_v51 = vadd.f32 %v1580_v47, %v385_v43  ;;  %v626_v52 = vadd.f32 %v1604_v48, %v393_v45 }
 0x13c   : > { %v1582_v54 = vpop.f32.mrf.mxu0  ;;  %v1606_v56 = vpop.f32.mrf.mxu1 }
 0x13d   : > { %634 = vst [vmem:[#allocation2 + $0x30] sm:$0xff] %v618_v51  ;;  %642 = vst [vmem:[#allocation2 + $0x40] sm:$0xff] %v626_v52  ;;  %v1583_v57 = vadd.f32 %v1582_v54, %v1581_v49  ;;  %v1607_v58 = vadd.f32 %v1606_v56, %v1605_v50  ;;  %v392_v49 = vld [vmem:[#allocation2 + $0x48] sm:$0xff] }
 0x13e   : > { %v1584_v59 = vpop.f32.mrf.mxu0  ;;  %v1608_v60 = vpop.f32.mrf.mxu1  ;;  %v400_v51 = vld [vmem:[#allocation2 + $0x28] sm:$0xff] }
 0x13f   : > { %v619_v61 = vadd.f32 %v1583_v57, %v386_v53  ;;  %v627_v62 = vadd.f32 %v1607_v58, %v394_v55 }
 0x140   : > { %v1585_v0 = vpop.f32.mrf.mxu0  ;;  %v1609_v2 = vpop.f32.mrf.mxu1 }
 0x141   : > { %635 = vst [vmem:[#allocation2] sm:$0xff] %v619_v61  ;;  %643 = vst [vmem:[#allocation2 + $0x20] sm:$0xff] %v627_v62  ;;  %v1586_v3 = vadd.f32 %v1585_v0, %v1584_v59  ;;  %v1610_v4 = vadd.f32 %v1609_v2, %v1608_v60 }
 0x142   : > { %v1587_v5 = vpop.f32.mrf.mxu0  ;;  %v1611_v6 = vpop.f32.mrf.mxu1 }
 0x143   : > { %v620_v7 = vadd.f32 %v1586_v3, %v387_v63  ;;  %v628_v8 = vadd.f32 %v1610_v4, %v395_v1 }
 0x144   : > { %v1588_v10 = vpop.f32.mrf.mxu0  ;;  %v1612_v12 = vpop.f32.mrf.mxu1 }
 0x145   : > { %636 = vst [vmem:[#allocation2 + $0x58] sm:$0xff] %v620_v7  ;;  %644 = vst [vmem:[#allocation2 + $0x10] sm:$0xff] %v628_v8  ;;  %v1589_v13 = vadd.f32 %v1588_v10, %v1587_v5  ;;  %v1613_v14 = vadd.f32 %v1612_v12, %v1611_v6 }
 0x146   : > { %v1590_v15 = vpop.f32.mrf.mxu0  ;;  %v1614_v16 = vpop.f32.mrf.mxu1 }
 0x147   : > { %v621_v17 = vadd.f32 %v1589_v13, %v388_v9  ;;  %v629_v18 = vadd.f32 %v1613_v14, %v396_v11 }
 0x148   : > { %v1591_v20 = vpop.f32.mrf.mxu0  ;;  %v1615_v22 = vpop.f32.mrf.mxu1 }
 0x149   : > { %637 = vst [vmem:[#allocation2 + $0x18] sm:$0xff] %v621_v17  ;;  %645 = vst [vmem:[#allocation2 + $0x38] sm:$0xff] %v629_v18  ;;  %v1592_v23 = vadd.f32 %v1591_v20, %v1590_v15  ;;  %v1616_v24 = vadd.f32 %v1615_v22, %v1614_v16 }
 0x14a   : > { %v1593_v25 = vpop.f32.mrf.mxu0  ;;  %v1617_v26 = vpop.f32.mrf.mxu1 }
 0x14b   : > { %v622_v27 = vadd.f32 %v1592_v23, %v389_v19  ;;  %v630_v28 = vadd.f32 %v1616_v24, %v397_v21 }
 0x14c   : > { %v1594_v30 = vpop.f32.mrf.mxu0  ;;  %v1618_v32 = vpop.f32.mrf.mxu1 }
 0x14d   : > { %638 = vst [vmem:[#allocation2 + $0x50] sm:$0xff] %v622_v27  ;;  %646 = vst [vmem:[#allocation2 + $0x60] sm:$0xff] %v630_v28  ;;  %v1595_v33 = vadd.f32 %v1594_v30, %v1593_v25  ;;  %v1619_v34 = vadd.f32 %v1618_v32, %v1617_v26 }
 0x14e   : > { %v1596_v35 = vpop.f32.mrf.mxu0  ;;  %v1620_v36 = vpop.f32.mrf.mxu1 }
 0x14f   : > { %v623_v37 = vadd.f32 %v1595_v33, %v390_v29  ;;  %v631_v38 = vadd.f32 %v1619_v34, %v398_v31 }
 0x150   : > { %v1597_v40 = vpop.f32.mrf.mxu0  ;;  %v1621_v42 = vpop.f32.mrf.mxu1 }
 0x151   : > { %639 = vst [vmem:[#allocation2 + $0x68] sm:$0xff] %v623_v37  ;;  %647 = vst [vmem:[#allocation2 + $0x70] sm:$0xff] %v631_v38  ;;  %v1598_v43 = vadd.f32 %v1597_v40, %v1596_v35  ;;  %v1622_v44 = vadd.f32 %v1621_v42, %v1620_v36 }
 0x152   : > { %v1599_v45 = vpop.f32.mrf.mxu0  ;;  %v1623_v46 = vpop.f32.mrf.mxu1 }
 0x153   : > { %v624_v47 = vadd.f32 %v1598_v43, %v391_v39  ;;  %v632_v48 = vadd.f32 %v1622_v44, %v399_v41 }
 0x154   : > { %v1600_v50 = vpop.f32.mrf.mxu0  ;;  %v1624_v52 = vpop.f32.mrf.mxu1 }
 0x155   : > { %640 = vst [vmem:[#allocation2 + $0x8] sm:$0xff] %v624_v47  ;;  %648 = vst [vmem:[#allocation2 + $0x78] sm:$0xff] %v632_v48  ;;  %v1601_v53 = vadd.f32 %v1600_v50, %v1599_v45  ;;  %v1625_v54 = vadd.f32 %v1624_v52, %v1623_v46 }
 0x157   : > { %v625_v55 = vadd.f32 %v1601_v53, %v392_v49  ;;  %v633_v56 = vadd.f32 %v1625_v54, %v400_v51 }
 0x159   : > { %641 = vst [vmem:[#allocation2 + $0x48] sm:$0xff] %v625_v55  ;;  %649 = vst [vmem:[#allocation2 + $0x28] sm:$0xff] %v633_v56 }
 0x15a PF: > { %v692_v57 = vld [vmem:[%s2136_s30 + $0x10] sm:$0xff]  ;;  %v690_v58 = vld [vmem:[%s2136_s30] sm:$0xff]  ;;  %v1994_v59 = vmov 0   ;;  %v693_v60 = vld [vmem:[%s2136_s30 + $0x18] sm:$0xff]  ;;  %s1450_s24 = sshll.u32 %s1978_s12, 7  ;;  %s1514_s16 = sshll.u32 %s1978_s12, 10 }
 0x15b   : > { %1829 = vset.pattern.permute.xlu1 %v1994_v59  ;;  %1828 = vset.pattern.permute.xlu0 %v1994_v59  ;;  %v691_v61 = vld [vmem:[%s2136_s30 + $0x8] sm:$0xff]  ;;  %v694_v63 = vld [vmem:[%s2136_s30 + $0x20] sm:$0xff]  ;;  %v1830_v0 = vld [vmem:[#allocation6 + $0x38] sm:$0xff]   ;;  %s654_s25 = sshra.s32 %s1450_s24, 3  ;;  %s1313_s9 = sshll.u32 %s2143_s0, 4  ;;  %s2247_s9 = int_to_ptr.vmem [resolvable:$true] %s1313_s9 }
 0x15c   : > { %718 = vperm.xlu1 %1829, %v692_v57   ;;  %708 = vperm.xlu0 %1828, %v690_v58   ;;  %v695_v62 = vld [vmem:[%s2136_s30 + $0x28] sm:$0xff]  ;;  %v1831_v1 = vld [vmem:[#allocation6 + $0x30] sm:$0xff]   ;;  %v1832_v2 = vld [vmem:[#allocation6 + $0x78] sm:$0xff]   ;;  %s1451_s26 = sshll.u32 %s654_s25, 2  ;;  %s2245_s15 = scalar_lea.hbm %s2304_s7, %s1514_s16 }
 0x15d   : > { %1690 = vmatprep.subr.bf16.mxu1 %v1830_v0  ;;  %v697_v3 = vld [vmem:[%s2136_s30 + $0x38] sm:$0xff]  ;;  %v696_v4 = vld [vmem:[%s2136_s30 + $0x30] sm:$0xff]  ;;  %1658 = vmatprep.subr.bf16.mxu0 %v1832_v2  ;;  %v1833_v6 = vld [vmem:[#allocation6 + $0x28] sm:$0xff]   ;;  %s2197_s29 = scalar_lea.vmem %s2300_s3, %s1451_s26  ;;  %s2316_s20 = sand.u32 1, %s1970_s10  }
 0x15e   : > { %1691 = vmatpush3.bf16.msra.mxu1 %v1830_v0  ;;  %v1834_v5 = vld [vmem:[#allocation6 + $0x70] sm:$0xff]   ;;  %1659 = vmatpush3.bf16.msra.mxu0 %v1832_v2  ;;  %v699_v7 = vld [vmem:[%s2136_s30 + $0x48] sm:$0xff]  ;;  %v698_v9 = vld [vmem:[%s2136_s30 + $0x40] sm:$0xff]  ;;  %s2253_s18 = scalar_lea.sflag [#allocation8], %s2316_s20  ;;  %s1904_s12 = scalar_lea.vmem %s2247_s9, 1024 }
 0x15f   : > { %1692 = vmatprep.subr.bf16.mxu1 %v1831_v1  ;;  %1660 = vmatprep.subr.bf16.mxu0 %v1834_v5  ;;  %v1836_v8 = vld [vmem:[#allocation6 + $0x68] sm:$0xff]   ;;  %v1835_v10 = vld [vmem:[#allocation6 + $0x20] sm:$0xff]   ;;  %v701_v12 = vld [vmem:[%s2136_s30 + $0x58] sm:$0xff]  ;;  %p1905_p10 = scmp.ne.s32.totalorder %s2247_s9, %s1904_s12  ;;  %s1995_s23 = smov [#allocation9]  }
 0x160   : > { %723 = vperm.xlu1 %1829, %v693_v60   ;;  %713 = vperm.xlu0 %1828, %v691_v61   ;;  %v1838_v11 = vld [vmem:[#allocation6 + $0x60] sm:$0xff]   ;;  %v700_v13 = vld [vmem:[%s2136_s30 + $0x50] sm:$0xff]  ;;  %v1837_v14 = vld [vmem:[#allocation6 + $0x18] sm:$0xff]   ;;  %s1908_s24 = sshll.u32 %s1995_s23, 4  ;;  %s1909_s24 = int_to_ptr.vmem [resolvable:$false] %s1908_s24 }
 0x161   : > { %v1840_v15 = vld [vmem:[#allocation6 + $0x58] sm:$0xff]   ;;  %v1845_v16 = vld [vmem:[%s2197_s29] sm:$0xff]   ;;  %v703_v17 = vld [vmem:[%s2136_s30 + $0x68] sm:$0xff]  ;;  %p1906_p11 = pnand %p1905_p10, %p2084_p0  ;;  %s1910_s25 = scalar_lea.vmem %s1909_s24, 2048 }
 0x162   : > { %1693 = vmatpush3.bf16.msra.mxu1 %v1831_v1  ;;  %1661 = vmatpush3.bf16.msra.mxu0 %v1834_v5  ;;  %v702_v18 = vld [vmem:[%s2136_s30 + $0x60] sm:$0xff]  ;;  %v1839_v19 = vld [vmem:[#allocation6 + $0x10] sm:$0xff]   ;;  %v705_v21 = vld [vmem:[%s2136_s30 + $0x78] sm:$0xff]  ;;  %p1911_p13 = scmp.lt.s32.totalorder %s2247_s9, %s1909_s24  ;;  %p1912_p1 = scmp.lt.s32.totalorder %s1910_s25, %s1904_s12 }
 0x163   : > { %1694 = vmatprep.subr.bf16.mxu1 %v1833_v6  ;;  %1662 = vmatprep.subr.bf16.mxu0 %v1836_v8  ;;  %v1842_v20 = vld [vmem:[#allocation6 + $0x50] sm:$0xff]   ;;  %v1841_v23 = vld [vmem:[#allocation6 + $0x8] sm:$0xff]   ;;  %v1843_v25 = vld [vmem:[#allocation6] sm:$0xff]   ;;  %p1907_p12 = pneg %p1906_p11 }
 0x164   : > { %733 = vperm.xlu1 %1829, %v695_v62   ;;  %728 = vperm.xlu0 %1828, %v694_v63   ;;  %v704_v22 = vld [vmem:[%s2136_s30 + $0x70] sm:$0xff]  ;;  %v1844_v24 = vld [vmem:[#allocation6 + $0x48] sm:$0xff]   ;;  %v1847_v26 = vld [vmem:[#allocation6 + $0x40] sm:$0xff]   ;;  %p1913_p2 = por %p1912_p1, %p1911_p13 }
 0x165   : > { %1706 = vmatprep.mubr.bf16.mxu1 %v1845_v16  ;;  %v1846_v27 = vld [vmem:[%s2197_s29 + $0x8] sm:$0xff]   ;;  %v1848_v28 = vld [vmem:[%s2197_s29 + $0x10] sm:$0xff]   ;;  %v1849_v29 = vld [vmem:[%s2197_s29 + $0x18] sm:$0xff]  }
 0x166   : > { %1695 = vmatpush3.bf16.msra.mxu1 %v1833_v6  ;;  %1663 = vmatpush3.bf16.msra.mxu0 %v1836_v8  ;;  %v1850_v30 = vld [vmem:[%s2197_s29 + $0x20] sm:$0xff]   ;;  %v1851_v31 = vld [vmem:[%s2197_s29 + $0x28] sm:$0xff]   ;;  %v1852_v32 = vld [vmem:[%s2197_s29 + $0x30] sm:$0xff]   ;;  %p1914_p3 = pnand %p1913_p2, %p1907_p12 }
 0x167   : > { %1696 = vmatprep.subr.bf16.mxu1 %v1835_v10  ;;  %1664 = vmatprep.subr.bf16.mxu0 %v1838_v11  ;;  %v1853_v33 = vld [vmem:[%s2197_s29 + $0x38] sm:$0xff]   ;;  %v674_v37 = vld [vmem:[#allocation2 + $0x30] sm:$0xff]  ;;  %v675_v39 = vld [vmem:[#allocation2] sm:$0xff] }
 0x168   : > { %743 = vperm.xlu1 %1829, %v697_v3   ;;  %738 = vperm.xlu0 %1828, %v696_v4   ;;  %v676_v36 = vld [vmem:[#allocation2 + $0x58] sm:$0xff]  ;;  %v679_v46 = vld [vmem:[#allocation2 + $0x68] sm:$0xff]  ;;  %v678_v47 = vld [vmem:[#allocation2 + $0x50] sm:$0xff] }
 0x169   : > { %v677_v38 = vld [vmem:[#allocation2 + $0x18] sm:$0xff]  ;;  %v681_v54 = vld [vmem:[#allocation2 + $0x48] sm:$0xff]  ;;  %v683_v61 = vld [vmem:[#allocation2 + $0x20] sm:$0xff] }
 0x16a   : > { %1697 = vmatpush3.bf16.msra.mxu1 %v1835_v10  ;;  %1665 = vmatpush3.bf16.msra.mxu0 %v1838_v11  ;;  %v680_v55 = vld [vmem:[#allocation2 + $0x8] sm:$0xff]  ;;  %v682_v62 = vld [vmem:[#allocation2 + $0x40] sm:$0xff]  ;;  %v685_v4 = vld [vmem:[#allocation2 + $0x38] sm:$0xff] }
 0x16b   : > { %1698 = vmatprep.subr.bf16.mxu1 %v1837_v14  ;;  %1666 = vmatprep.subr.bf16.mxu0 %v1840_v15  ;;  %v684_v5 = vld [vmem:[#allocation2 + $0x10] sm:$0xff] }
 0x16c   : > { %753 = vperm.xlu1 %1829, %v699_v7   ;;  %748 = vperm.xlu0 %1828, %v698_v9   ;;  %v687_v11 = vld [vmem:[#allocation2 + $0x70] sm:$0xff] }
 0x16e   : > { %1699 = vmatpush3.bf16.msra.mxu1 %v1837_v14  ;;  %1667 = vmatpush3.bf16.msra.mxu0 %v1840_v15 }
 0x16f   : > { %1700 = vmatprep.subr.bf16.mxu1 %v1839_v19  ;;  %1668 = vmatprep.subr.bf16.mxu0 %v1842_v20 }
 0x170   : > { %763 = vperm.xlu1 %1829, %v701_v12   ;;  %758 = vperm.xlu0 %1828, %v700_v13   ;;  %v686_v12 = vld [vmem:[#allocation2 + $0x60] sm:$0xff] }
 0x172   : > { %1701 = vmatpush3.bf16.msra.mxu1 %v1839_v19  ;;  %1669 = vmatpush3.bf16.msra.mxu0 %v1842_v20  ;;  %v688_v19 = vld [vmem:[#allocation2 + $0x78] sm:$0xff] }
 0x173   : > { %1702 = vmatprep.subr.bf16.mxu1 %v1841_v23  ;;  %1670 = vmatprep.subr.bf16.mxu0 %v1844_v24 }
 0x174   : > { %773 = vperm.xlu1 %1829, %v703_v17   ;;  %768 = vperm.xlu0 %1828, %v702_v18   ;;  %v689_v18 = vld [vmem:[#allocation2 + $0x28] sm:$0xff] }
 0x176   : > { %1703 = vmatpush3.bf16.msra.mxu1 %v1841_v23  ;;  %1671 = vmatpush3.bf16.msra.mxu0 %v1844_v24 }
 0x177   : > { %1704 = vmatprep.subr.bf16.mxu1 %v1843_v25  ;;  %1672 = vmatprep.subr.bf16.mxu0 %v1847_v26 }
 0x178   : > { %783 = vperm.xlu1 %1829, %v705_v21   ;;  %778 = vperm.xlu0 %1828, %v704_v22  }
 0x17a   : > { %1705 = vmatpush3.bf16.msra.mxu1 %v1843_v25  ;;  %1673 = vmatpush3.bf16.msra.mxu0 %v1847_v26 }
 0x17d   : > { %1707 = vmatmul.mubr.bf16.vlgmr.msra.gmra.mxu1 %v1846_v27 }
 0x17e   : > { %1710 = vmatprep.mubr.bf16.mxu1 %v1848_v28 }
 0x185   : > { %1711 = vmatmul.mubr.bf16.gmra.mxu1 %v1849_v29 }
 0x186   : > { %1714 = vmatprep.mubr.bf16.mxu1 %v1850_v30 }
 0x18d   : > { %1715 = vmatmul.mubr.bf16.gmra.mxu1 %v1851_v31 }
 0x18e   : > { %1718 = vmatprep.mubr.bf16.mxu1 %v1852_v32 }
 0x195   : > { %1719 = vmatmul.mubr.bf16.gmra.mxu1 %v1853_v33 }
 0x1d7   : > { %v719_v34 = vpop.permute.xlu1 %718  ;;  %v709_v35 = vpop.permute.xlu0 %708 }
 0x1d8   : > { %v788_v42 = vmul.f32 %v719_v34, %v676_v36  ;;  %v786_v43 = vmul.f32 %v709_v35, %v674_v37  ;;  %v2216_v36 = vld [vmem:[%s2303_s6] ss:$0 sm:$0xff] }
 0x1db   : > { %v724_v40 = vpop.permute.xlu1 %723  ;;  %v714_v41 = vpop.permute.xlu0 %713 }
 0x1dc   : > { %v789_v44 = vmul.f32 %v724_v40, %v677_v38  ;;  %v787_v45 = vmul.f32 %v714_v41, %v675_v39 }
 0x1de   : > { %v803_v48 = vpack.c.bf16 %v789_v44, %v788_v42  ;;  %v802_v49 = vpack.c.bf16 %v787_v45, %v786_v43 }
 0x1df   : > { %v734_v50 = vpop.permute.xlu1 %733  ;;  %v729_v51 = vpop.permute.xlu0 %728 }
 0x1e0   : > { %v791_v52 = vmul.f32 %v734_v50, %v679_v46  ;;  %v790_v53 = vmul.f32 %v729_v51, %v678_v47  ;;  %1674 = vmatprep.mubr.bf16.mxu0 %v802_v49 }
 0x1e1   : > { %1675 = vmatmul.mubr.bf16.vlgmr.msra.gmra.mxu0 %v803_v48 }
 0x1e2   : > { %v804_v56 = vpack.c.bf16 %v791_v52, %v790_v53 }
 0x1e3   : > { %v744_v57 = vpop.permute.xlu1 %743  ;;  %v739_v58 = vpop.permute.xlu0 %738 }
 0x1e4   : > { %v793_v59 = vmul.f32 %v744_v57, %v681_v54  ;;  %v792_v60 = vmul.f32 %v739_v58, %v680_v55  ;;  %1678 = vmatprep.mubr.bf16.mxu0 %v804_v56 }
 0x1e6   : > { %v805_v63 = vpack.c.bf16 %v793_v59, %v792_v60 }
 0x1e7   : > { %v754_v0 = vpop.permute.xlu1 %753  ;;  %v749_v1 = vpop.permute.xlu0 %748 }
 0x1e8   : > { %v795_v2 = vmul.f32 %v754_v0, %v683_v61  ;;  %v794_v3 = vmul.f32 %v749_v1, %v682_v62 }
 0x1e9   : > { %1679 = vmatmul.mubr.bf16.gmra.mxu0 %v805_v63 }
 0x1ea   : > { %v806_v6 = vpack.c.bf16 %v795_v2, %v794_v3 }
 0x1eb   : > { %v764_v7 = vpop.permute.xlu1 %763  ;;  %v759_v8 = vpop.permute.xlu0 %758 }
 0x1ec   : > { %v797_v9 = vmul.f32 %v764_v7, %v685_v4  ;;  %v796_v10 = vmul.f32 %v759_v8, %v684_v5  ;;  %1682 = vmatprep.mubr.bf16.mxu0 %v806_v6 }
 0x1ee   : > { %v807_v13 = vpack.c.bf16 %v797_v9, %v796_v10 }
 0x1ef   : > { %v774_v14 = vpop.permute.xlu1 %773  ;;  %v769_v15 = vpop.permute.xlu0 %768 }
 0x1f0   : > { %v799_v16 = vmul.f32 %v774_v14, %v687_v11  ;;  %v798_v17 = vmul.f32 %v769_v15, %v686_v12 }
 0x1f1   : > { %1683 = vmatmul.mubr.bf16.gmra.mxu0 %v807_v13 }
 0x1f2   : > { %v808_v20 = vpack.c.bf16 %v799_v16, %v798_v17 }
 0x1f3   : > { %v784_v21 = vpop.permute.xlu1 %783  ;;  %v779_v22 = vpop.permute.xlu0 %778 }
 0x1f4   : > { %v801_v23 = vmul.f32 %v784_v21, %v689_v18  ;;  %v800_v24 = vmul.f32 %v779_v22, %v688_v19  ;;  %1686 = vmatprep.mubr.bf16.mxu0 %v808_v20 }
 0x1f6   : > { %v809_v25 = vpack.c.bf16 %v801_v23, %v800_v24 }
 0x1f9   : > { %1687 = vmatmul.mubr.bf16.gmra.mxu0 %v809_v25 }
 0x23d   : > { %v1708_v26 = vpop.f32.mrf.mxu1 }
 0x23f   : > { %v1117_v27 = vpop.f32.mrf.mxu1 }
 0x241   : > { %v1709_v28 = vpop.f32.mrf.mxu1 }
 0x243   : > { %v1120_v29 = vpop.f32.mrf.mxu1 }
 0x245   : > { %v1712_v30 = vpop.f32.mrf.mxu1 }
 0x247   : > { %v1133_v31 = vpop.f32.mrf.mxu1 }
 0x249   : > { %v1713_v32 = vpop.f32.mrf.mxu1 }
 0x24b   : > { %v1136_v33 = vpop.f32.mrf.mxu1 }
 0x24d   : > { %v1716_v38 = vpop.f32.mrf.mxu1 }
 0x24f   : > { %v1149_v44 = vpop.f32.mrf.mxu1 }
 0x251   : > { %v1717_v54 = vpop.f32.mrf.mxu1 }
 0x253   : > { %v1152_v0 = vpop.f32.mrf.mxu1 }
 0x255   : > { %v1720_v10 = vpop.f32.mrf.mxu1 }
 0x257   : > { %v1165_v19 = vpop.f32.mrf.mxu1 }
 0x2a1   : > { %v1676_v34 = vpop.f32.mrf.mxu0 }
 0x2a2   : > { %v1126_v35 = vadd.f32 %v1708_v26, %v1676_v34 }
 0x2a3   : > { %v924_v37 = vpop.f32.mrf.mxu0 }
 0x2a4   : > { %v1118_v39 = vadd.f32 %v1117_v27, %v924_v37  ;;  %v1189_v41 = vadd.f32 %v2216_v36, %v1126_v35 }
 0x2a5   : > { %v1677_v40 = vpop.f32.mrf.mxu0 }
 0x2a6   : > { %v1129_v42 = vadd.f32 %v1709_v28, %v1677_v40  ;;  %v1187_v45 = vadd.f32 %v2216_v36, %v1118_v39  ;;  %v1205_v49 = vmax.f32 %v1189_v41, 0.0 }
 0x2a7   : > { %v927_v43 = vpop.f32.mrf.mxu0 }
 0x2a8   : > { %v1190_v46 = vadd.f32 %v2216_v36, %v1129_v42  ;;  %v1121_v47 = vadd.f32 %v1120_v29, %v927_v43  ;;  %v1203_v55 = vmax.f32 %v1187_v45, 0.0  ;;  %v1721_v29 = vpop.f32.mrf.mxu1 }
 0x2a9   : > { %v1680_v48 = vpop.f32.mrf.mxu0 }
 0x2aa   : > { %v1206_v50 = vmax.f32 %v1190_v46, 0.0  ;;  %v1188_v51 = vadd.f32 %v2216_v36, %v1121_v47  ;;  %v1142_v52 = vadd.f32 %v1712_v30, %v1680_v48  ;;  %v1168_v40 = vpop.f32.mrf.mxu1 }
 0x2ab   : > { %v940_v53 = vpop.f32.mrf.mxu0 }
 0x2ac   : > { %v1523_v56 = vpack.c.bf16 %v1206_v50, %v1205_v49  ;;  %v1204_v57 = vmax.f32 %v1188_v51, 0.0  ;;  %v1134_v58 = vadd.f32 %v1133_v31, %v940_v53  ;;  %v1193_v61 = vadd.f32 %v2216_v36, %v1142_v52 }
 0x2ad   : > { %v1681_v59 = vpop.f32.mrf.mxu0 }
 0x2ae   : > { %1555 = vst [vmem:[%s2143_s0 + $0x8] sm:$0xff] %v1523_v56   ;;  %v1518_v60 = vpack.c.bf16 %v1204_v57, %v1203_v55  ;;  %v1145_v62 = vadd.f32 %v1713_v32, %v1681_v59  ;;  %v1191_v1 = vadd.f32 %v2216_v36, %v1134_v58  ;;  %v1209_v5 = vmax.f32 %v1193_v61, 0.0 }
 0x2af   : > { %v943_v63 = vpop.f32.mrf.mxu0 }
 0x2b0   : > { %1519 = vst [vmem:[%s2143_s0] sm:$0xff] %v1518_v60   ;;  %v1194_v2 = vadd.f32 %v2216_v36, %v1145_v62  ;;  %v1137_v3 = vadd.f32 %v1136_v33, %v943_v63  ;;  %v1207_v11 = vmax.f32 %v1191_v1, 0.0 }
 0x2b1   : > { %v1684_v4 = vpop.f32.mrf.mxu0 }
 0x2b2   : > { %v1210_v6 = vmax.f32 %v1194_v2, 0.0  ;;  %v1192_v7 = vadd.f32 %v2216_v36, %v1137_v3  ;;  %v1158_v8 = vadd.f32 %v1716_v38, %v1684_v4 }
 0x2b3   : > { %v956_v9 = vpop.f32.mrf.mxu0 }
 0x2b4   : > { %v1533_v12 = vpack.c.bf16 %v1210_v6, %v1209_v5  ;;  %v1208_v13 = vmax.f32 %v1192_v7, 0.0  ;;  %v1150_v14 = vadd.f32 %v1149_v44, %v956_v9  ;;  %v1197_v17 = vadd.f32 %v2216_v36, %v1158_v8 }
 0x2b5   : > { %v1685_v15 = vpop.f32.mrf.mxu0 }
 0x2b6   : > { %1557 = vst [vmem:[%s2143_s0 + $0x18] sm:$0xff] %v1533_v12   ;;  %v1528_v16 = vpack.c.bf16 %v1208_v13, %v1207_v11  ;;  %v1161_v18 = vadd.f32 %v1717_v54, %v1685_v15  ;;  %v1195_v21 = vadd.f32 %v2216_v36, %v1150_v14  ;;  %v1213_v25 = vmax.f32 %v1197_v17, 0.0 }
 0x2b7   : > { %v959_v20 = vpop.f32.mrf.mxu0 }
 0x2b8   : > { %1556 = vst [vmem:[%s2143_s0 + $0x10] sm:$0xff] %v1528_v16   ;;  %v1198_v22 = vadd.f32 %v2216_v36, %v1161_v18  ;;  %v1153_v23 = vadd.f32 %v1152_v0, %v959_v20  ;;  %v1211_v31 = vmax.f32 %v1195_v21, 0.0 }
 0x2b9   : > { %v1688_v24 = vpop.f32.mrf.mxu0 }
 0x2ba   : > { %v1214_v26 = vmax.f32 %v1198_v22, 0.0  ;;  %v1196_v27 = vadd.f32 %v2216_v36, %v1153_v23  ;;  %v1174_v28 = vadd.f32 %v1720_v10, %v1688_v24 }
 0x2bb   : > { %v972_v30 = vpop.f32.mrf.mxu0 }
 0x2bc   : > { %v1543_v32 = vpack.c.bf16 %v1214_v26, %v1213_v25  ;;  %v1212_v33 = vmax.f32 %v1196_v27, 0.0  ;;  %v1166_v34 = vadd.f32 %v1165_v19, %v972_v30  ;;  %v1201_v38 = vadd.f32 %v2216_v36, %v1174_v28 }
 0x2bd   : > { %v1689_v35 = vpop.f32.mrf.mxu0 }
 0x2be   : > { %1559 = vst [vmem:[%s2143_s0 + $0x28] sm:$0xff] %v1543_v32   ;;  %v1538_v37 = vpack.c.bf16 %v1212_v33, %v1211_v31  ;;  %v1177_v39 = vadd.f32 %v1721_v29, %v1689_v35  ;;  %v1199_v42 = vadd.f32 %v2216_v36, %v1166_v34  ;;  %v1217_v45 = vmax.f32 %v1201_v38, 0.0 }
 0x2bf   : > { %v975_v41 = vpop.f32.mrf.mxu0 }
 0x2c0   : > { %1558 = vst [vmem:[%s2143_s0 + $0x20] sm:$0xff] %v1538_v37   ;;  %v1202_v43 = vadd.f32 %v2216_v36, %v1177_v39  ;;  %v1169_v44 = vadd.f32 %v1168_v40, %v975_v41  ;;  %v1215_v48 = vmax.f32 %v1199_v42, 0.0 }
 0x2c2   : > { %v1218_v46 = vmax.f32 %v1202_v43, 0.0  ;;  %v1200_v47 = vadd.f32 %v2216_v36, %v1169_v44 }
 0x2c4   : > { %v1553_v49 = vpack.c.bf16 %v1218_v46, %v1217_v45  ;;  %v1216_v50 = vmax.f32 %v1200_v47, 0.0 }
 0x2c6   : > { %1561 = vst [vmem:[%s2143_s0 + $0x38] sm:$0xff] %v1553_v49   ;;  %v1548_v51 = vpack.c.bf16 %v1216_v50, %v1215_v48 }
 0x2c8   : > { %1560 = vst [vmem:[%s2143_s0 + $0x30] sm:$0xff] %v1548_v51  }
 0x2c9   : > { %1917 = shalt.err (!%p1914_p3)
}
 0x2ca   : > { %s1918_s0 = scalar_lea.hbm %s2245_s15, 1024  ;;  %s1922_s28 = scalar_lea.hbm %s2304_s7, 2048 }
 0x2cb   : > { %p1919_p5 = scmp.ne.s32.totalorder %s2245_s15, %s1918_s0  ;;  %p1923_p7 = scmp.lt.s32.totalorder %s2245_s15, %s2304_s7 }
 0x2cc   : > { %p1924_p9 = scmp.lt.s32.totalorder %s1922_s28, %s1918_s0 }
 0x2cd   : > { %p1920_p8 = pnand %p1919_p5, %p2084_p0 }
 0x2ce   : > { %p1925_p10 = por %p1924_p9, %p1923_p7 }
 0x2cf   : > { %p1921_p6 = pneg %p1920_p8 }
 0x2d1   : > { %p1926_p11 = pnand %p1925_p10, %p1921_p6 }
 0x2d3   : > { %1929 = shalt.err (!%p1926_p11)
}
 0x2d4   : > { %s1996_s8 = smov 64   ;;  %s1997_s16 = smov 4  }
 0x2d5   : > { %1742 = dma.vmem_to_hbm [thread:$0]  (%p2084_p0), %s2247_s9, 1024, %s2245_s15, %s2253_s18, %s1996_s8, %s1996_s8, %s1997_s16  }
 0x2d6 PF: > { %p1754_p12 = scmp.ge.s32.totalorder %s1986_s14, 2  ;;  %s1328_s5 = sand.u32 1, %s1966_s1  }
 0x2d7   : > { %s1329_s17 = scalar_lea.sflag [#allocation8], %s1328_s5 }
 0x2d8   : > { %p1749_p13 = pnand %p1754_p12, %p2091_p4 }
 0x2da   : > { %p1750_p1 = pneg %p1749_p13 }
 0x2dc   : > { %1961 = dma.done.wait (%p1750_p1), %s1329_s17, 1024  }
 0x2dd   : > { %1963 = vsyncadd (%p1750_p1), %s1329_s17, 4294966272  ;;  %s31_s14 = sadd.s32 1, %s1986_s14   ;;  %s2317_s19 = sld [smem:[#allocation13_spill]] }
 0x2de   : > { %p28_p2 = scmp.ge.s32.totalorder %s31_s14, 4   ;;  %s2318_s1 = smov %s1970_s10 }
 0x2df   : > { %s2319_s10 = smov %s1974_s11  ;;  %s2320_s11 = smov %s2097_s22 }
 0x2e0   : > { %s2321_s12 = smov %s1982_s13  ;;  %30 = sbr.rel (!%p28_p2) target bundleno = 31 (0x1f), region = 97 }
 0x2e3   : > { %s2322_s13 = smov %s2317_s19 }
 0x2e5   :  { %1334 = vsyncpa [#allocation7], 1 }
 0x2e6   :  { %1336 = vsyncpa [#allocation7 + $0x1], 1 }
 0x2e7   :  { %1337 = vsyncpa [#allocation8], 1 }
 0x2e8   :  { %1339 = vsyncpa [#allocation8 + $0x1], 1 }

</bundles_post_ra>
